<compile_context>
chip_gen: v7x
topology: tpu7x:2x2x1
jax: 0.10.0
libtpu: 0.0.40
codegen_flags: <defaults>
</compile_context>

<pallas_src>
import functools

import jax
import jax.numpy as jnp
from jax.experimental import pallas as pl
from jax.experimental.pallas import tpu as pltpu

CLASS_WEIGHTS = (1.0, 1.2)      # torch.nn.CrossEntropyLoss(weight=[1.0, 1.2])
TB_MAX_ITEMS = 128 * 1024       # batch items per grid step (lane axis), multiple of 128
NUM_SPLITS = 2                  # leading "parallel" grid axis (v7x has 2 TensorCores)
PALLAS_MIN_BATCH = 4096         # below this, the fused-XLA fast path wins
LANE = 128


def _wce_kernel(x_ref, lbl_ref, out_ref, nacc_ref, dacc_ref, *,
                n_items, half, w0, w1):
    """One (2, tb) logit tile + (1, tb) label tile -> per-lane partial sums."""
    c = pl.program_id(0)                 # parallel slice (TensorCore on v7x)
    i = pl.program_id(1)                 # reduction step within the slice
    tb = lbl_ref.shape[-1]

    @pl.when(i == 0)
    def _init():
        nacc_ref[...] = jnp.zeros_like(nacc_ref)
        dacc_ref[...] = jnp.zeros_like(dacc_ref)

    # 2-class closed form: nll = softplus(+-(x0 - x1)); f32 upcast happens in-kernel
    # (v5e's VPU/EUP have no bf16 path).
    x0 = x_ref[0:1, :].astype(jnp.float32)           # class-0 logits, (1, tb)
    x1 = x_ref[1:2, :].astype(jnp.float32)           # class-1 logits, (1, tb)
    d = x0 - x1

    lbl = lbl_ref[...]                               # (1, tb) int32 in {0, 1}
    is_one = lbl == 1

    # Validity mask from the *intended* (unclamped) tile start.  Kills the ragged tail
    # of the last tile and the whole duplicated tile of the second core slice.  Applied
    # before the exp so OOB garbage (possibly +-inf/NaN) cannot reach the accumulator.
    start = (c * half + i) * tb
    col = jax.lax.broadcasted_iota(jnp.int32, (1, tb), 1)
    inb = col < (n_items - start)

    z = jnp.where(is_one, d, -d)
    z = jnp.where(inb, z, 0.0)
    w = jnp.where(is_one, jnp.float32(w1), jnp.float32(w0))
    w = jnp.where(inb, w, 0.0)

    # Numerically stable softplus(z) = log(1 + exp(z)).
    nll = jnp.maximum(z, 0.0) + jnp.log(1.0 + jnp.exp(-jnp.abs(z)))

    # Per-lane partial sums: plain VPU adds, no cross-lane work in the hot loop.
    nacc_ref[...] += w * nll
    dacc_ref[...] += w

    # Single cross-lane reduction + one lane-dense scalar write-back per core slice.
    @pl.when(i == pl.num_programs(1) - 1)
    def _finalize():
        num = jnp.sum(nacc_ref[...], axis=1, keepdims=True)    # (1, 1)
        den = jnp.sum(dacc_ref[...], axis=1, keepdims=True)    # (1, 1)
        lane = jax.lax.broadcasted_iota(jnp.int32, (1, LANE), 1)
        out_ref[0] = jnp.where(lane == 0, num, jnp.where(lane == 1, den, 0.0))


def _pallas_weighted_ce(pre, label, *, tb_max=TB_MAX_ITEMS):
    """sum(w_y * nll) / sum(w_y) for 2-class logits, streamed through VMEM."""
    b, c = pre.shape
    assert c == 2, "Crossentropy_Loss_weighted is a 2-class loss (weights [1.0, 1.2])."

    # Tile sizing: biggest lane tile that fits VMEM (per-step overhead ~0.35us).
    # Tiles are 128-multiples (ragged last tile masked in-kernel) unless one tile
    # covers the whole batch, in which case the block equals the full array dims.
    if b < 2 * LANE:
        tb = b                                       # one tile == full batch
    else:
        tb = min(tb_max, pl.cdiv(pl.cdiv(b, NUM_SPLITS), LANE) * LANE)
    nblocks = pl.cdiv(b, tb)
    half = pl.cdiv(nblocks, NUM_SPLITS)              # reduction steps per core slice

    # Layout plumbing only: classes on sublanes, batch lane-dense.  Inputs keep their
    # original dtype (f32 upcast happens in-kernel).
    pre_t = pre.T                                    # (2, B)
    lbl2d = label.astype(jnp.int32).reshape(1, b)    # (1, B)

    def in_map(s, i):
        # Clamp so the possible extra step of the second core slice re-reads the last
        # real tile; its contribution is fully masked inside the kernel.
        return (0, jnp.minimum(s * half + i, nblocks - 1))

    kernel = functools.partial(_wce_kernel, n_items=b, half=half,
                               w0=CLASS_WEIGHTS[0], w1=CLASS_WEIGHTS[1])

    out = pl.pallas_call(
        kernel,
        out_shape=jax.ShapeDtypeStruct((NUM_SPLITS, 1, LANE), jnp.float32),
        grid_spec=pltpu.PrefetchScalarGridSpec(
            num_scalar_prefetch=0,
            grid=(NUM_SPLITS, half),
            in_specs=[
                pl.BlockSpec((2, tb), in_map),       # logits tile (classes on sublanes)
                pl.BlockSpec((1, tb), in_map),       # labels tile (lane-dense)
            ],
            out_specs=pl.BlockSpec((1, 1, LANE), lambda s, i: (s, 0, 0)),
            scratch_shapes=[
                pltpu.VMEM((1, tb), jnp.float32),    # per-lane numerator partials
                pltpu.VMEM((1, tb), jnp.float32),    # per-lane denominator partials
            ],
        ),
        compiler_params=pltpu.CompilerParams(
            dimension_semantics=("parallel", "arbitrary"),
            # 48 MiB: worst-case (8,128)-padded footprint of a 128K tile is ~24 MiB;
            # this raises v5e's 16 MiB default and stays under v7x's 64 MiB physical.
            vmem_limit_bytes=48 * 1024 * 1024,
        ),
    )(pre_t, lbl2d)

    num = jnp.sum(out[:, 0, 0])
    den = jnp.sum(out[:, 0, 1])
    return num / den


def _weighted_ce_fastpath(pre, label):
    # Same closed form as one fused XLA expression: for small batches the kernel's
    # transpose + pallas_call dispatch overhead dominates the ~KB of data.
    x = pre.astype(jnp.float32)
    d = x[:, 0] - x[:, 1]
    lbl = label.astype(jnp.int32)
    z = jnp.where(lbl == 1, d, -d)
    nll = jnp.maximum(z, 0.0) + jnp.log1p(jnp.exp(-jnp.abs(z)))
    w = jnp.where(lbl == 1, jnp.float32(CLASS_WEIGHTS[1]), jnp.float32(CLASS_WEIGHTS[0]))
    return jnp.sum(w * nll) / jnp.sum(w)


def crossentropy_loss_weighted(pre, label, rep_anchor=None, rep_candidate=None, *,
                               force_pallas=False):
    """pre: [B, 2] logits; label: [B] int class ids in {0, 1}.  rep_anchor and
    rep_candidate are accepted for signature parity with the PyTorch module but ignored,
    exactly as the reference forward ignores them.  Returns the weighted-mean CE."""
    del rep_anchor, rep_candidate
    b, _ = pre.shape
    if b < PALLAS_MIN_BATCH and not force_pallas:
        return _weighted_ce_fastpath(pre, label)
    return _pallas_weighted_ce(pre, label)


def _reference_loss(pre, label):
    # Independent reference (generic log-softmax + gather), for testing only.
    logp = jax.nn.log_softmax(pre.astype(jnp.float32), axis=-1)
    nll = -jnp.take_along_axis(logp, label.astype(jnp.int32)[:, None], axis=-1)[:, 0]
    w = jnp.asarray(CLASS_WEIGHTS, jnp.float32)[label]
    return jnp.sum(w * nll) / jnp.sum(w)


if __name__ == "__main__":
    key = jax.random.PRNGKey(0)
    k1, k2, k3, k4 = jax.random.split(key, 4)

    # Shapes consistent with the module: pre [B, 2] logits, label [B] in {0, 1};
    # rep_anchor / rep_candidate [B, D] (ignored by the reference forward).
    B, C, D = 8, 2, 32
    pre = jax.random.normal(k1, (B, C), dtype=jnp.float32)
    label = jax.random.bernoulli(k2, 0.5, (B,)).astype(jnp.int32)
    rep_anchor = jax.random.normal(k3, (B, D), dtype=jnp.float32)      # ignored
    rep_candidate = jax.random.normal(k4, (B, D), dtype=jnp.float32)   # ignored

    # 1) Public entry point (small-batch fused-XLA fast path).
    loss_fast = crossentropy_loss_weighted(pre, label, rep_anchor, rep_candidate)
    # 2) Pallas kernel on the same tiny batch (single full-batch tile, both grid slices).
    loss_pallas_small = crossentropy_loss_weighted(
        pre, label, rep_anchor, rep_candidate, force_pallas=True)
    ref_small = _reference_loss(pre, label)

    # 3) Pallas kernel with a tile override to exercise multi-step accumulation,
    #    the ragged last tile, and the duplicated/masked tile of the 2-way core split,
    #    still at a tiny problem size (B=700, tile=256 -> 3 real tiles + 1 duplicate).
    k5, k6 = jax.random.split(k3)
    B2 = 700
    pre2 = jax.random.normal(k5, (B2, C), dtype=jnp.float32)
    label2 = jax.random.bernoulli(k6, 0.5, (B2,)).astype(jnp.int32)
    loss_pallas_big = _pallas_weighted_ce(pre2, label2, tb_max=256)
    ref_big = _reference_loss(pre2, label2)

    jax.block_until_ready((loss_fast, loss_pallas_small, loss_pallas_big))

    assert jnp.allclose(loss_fast, ref_small, rtol=1e-5, atol=1e-5), (loss_fast, ref_small)
    assert jnp.allclose(loss_pallas_small, ref_small, rtol=1e-5, atol=1e-5), (
        loss_pallas_small, ref_small)
    assert jnp.allclose(loss_pallas_big, ref_big, rtol=1e-5, atol=1e-5), (
        loss_pallas_big, ref_big)
    print("KERNEL_OK")
</pallas_src>

<mosaic_0001>
module attributes {stable_mosaic.version = 11 : i64} {
  func.func @_wce_kernel(%arg0: i32, %arg1: i32, %arg2: memref<2x8xf32, #tpu.memory_space<vmem>>, %arg3: memref<1x8xi32, #tpu.memory_space<vmem>>, %arg4: memref<1x1x128xf32, #tpu.memory_space<vmem>>, %arg5: memref<1x8xf32, #tpu.memory_space<vmem>>, %arg6: memref<1x8xf32, #tpu.memory_space<vmem>>) attributes {dimension_semantics = [#tpu.dimension_semantics<parallel>, #tpu.dimension_semantics<arbitrary>], iteration_bounds = array<i64: 2, 1>, scalar_prefetch = 0 : i64, scratch_operands = 2 : i64, tpu.core_type = #tpu.core_type<tc>, window_params = [{transform_indices = @transform_0, window_bounds = array<i64: 2, 8>}, {transform_indices = @transform_1, window_bounds = array<i64: 1, 8>}, {transform_indices = @transform_2, window_bounds = array<i64: 1, 1, 128>}]} {
    %c0_i32 = arith.constant 0 : i32
    %0 = arith.cmpi eq, %arg1, %c0_i32 : i32
    %1 = arith.extui %0 : i1 to i32
    %c0_i32_0 = arith.constant 0 : i32
    %2 = arith.cmpi ne, %1, %c0_i32_0 : i32
    scf.if %2 {
      %cst_24 = arith.constant 0.000000e+00 : f32
      %46 = vector.broadcast %cst_24 : f32 to vector<1x8xf32>
      %c0_25 = arith.constant 0 : index
      %c0_26 = arith.constant 0 : index
      %47 = vector.load %arg5[%c0_25, %c0_26] : memref<1x8xf32, #tpu.memory_space<vmem>>, vector<1x8xf32>
      tpu.vector_store %arg5[%c0_25, %c0_26], %46 {strides = array<i32>} : memref<1x8xf32, #tpu.memory_space<vmem>>, vector<1x8xf32>,
      %cst_27 = arith.constant 0.000000e+00 : f32
      %48 = vector.broadcast %cst_27 : f32 to vector<1x8xf32>
      %c0_28 = arith.constant 0 : index
      %c0_29 = arith.constant 0 : index
      %49 = vector.load %arg6[%c0_28, %c0_29] : memref<1x8xf32, #tpu.memory_space<vmem>>, vector<1x8xf32>
      tpu.vector_store %arg6[%c0_28, %c0_29], %48 {strides = array<i32>} : memref<1x8xf32, #tpu.memory_space<vmem>>, vector<1x8xf32>,
    } else {
    }
    %c0 = arith.constant 0 : index
    %c0_1 = arith.constant 0 : index
    %3 = vector.load %arg2[%c0, %c0_1] : memref<2x8xf32, #tpu.memory_space<vmem>>, vector<1x8xf32>
    %c1 = arith.constant 1 : index
    %c0_2 = arith.constant 0 : index
    %4 = vector.load %arg2[%c1, %c0_2] : memref<2x8xf32, #tpu.memory_space<vmem>>, vector<1x8xf32>
    %5 = arith.subf %3, %4 : vector<1x8xf32>
    %c0_3 = arith.constant 0 : index
    %c0_4 = arith.constant 0 : index
    %6 = vector.load %arg3[%c0_3, %c0_4] : memref<1x8xi32, #tpu.memory_space<vmem>>, vector<1x8xi32>
    %c1_i32 = arith.constant 1 : i32
    %7 = vector.broadcast %c1_i32 : i32 to vector<1x8xi32>
    %8 = arith.cmpi eq, %6, %7 : vector<1x8xi32>
    %c1_i32_5 = arith.constant 1 : i32
    %9 = arith.muli %arg0, %c1_i32_5 : i32
    %10 = arith.addi %9, %arg1 : i32
    %c8_i32 = arith.constant 8 : i32
    %11 = arith.muli %10, %c8_i32 : i32
    %12 = tpu.iota {dimensions = array<i32: 1>} : vector<1x8xi32>
    %c8_i32_6 = arith.constant 8 : i32
    %13 = arith.subi %c8_i32_6, %11 : i32
    %14 = vector.broadcast %13 : i32 to vector<1x8xi32>
    %15 = arith.cmpi slt, %12, %14 : vector<1x8xi32>
    %cst = arith.constant 0.000000e+00 : f32
    %16 = vector.broadcast %cst : f32 to vector<1x8xf32>
    %17 = arith.subf %16, %5 : vector<1x8xf32>
    %18 = arith.select %8, %5, %17 : vector<1x8xi1>, vector<1x8xf32>
    %cst_7 = arith.constant 0.000000e+00 : f32
    %19 = vector.broadcast %cst_7 : f32 to vector<1x8xf32>
    %20 = arith.select %15, %18, %19 : vector<1x8xi1>, vector<1x8xf32>
    %cst_8 = arith.constant 1.200000e+00 : f32
    %cst_9 = arith.constant 1.000000e+00 : f32
    %21 = vector.broadcast %cst_8 : f32 to vector<1x8xf32>
    %22 = vector.broadcast %cst_9 : f32 to vector<1x8xf32>
    %23 = arith.select %8, %21, %22 : vector<1x8xi1>, vector<1x8xf32>
    %cst_10 = arith.constant 0.000000e+00 : f32
    %24 = vector.broadcast %cst_10 : f32 to vector<1x8xf32>
    %25 = arith.select %15, %23, %24 : vector<1x8xi1>, vector<1x8xf32>
    %cst_11 = arith.constant 0.000000e+00 : f32
    %26 = vector.broadcast %cst_11 : f32 to vector<1x8xf32>
    %27 = arith.maximumf %20, %26 : vector<1x8xf32>
    %28 = math.absf %20 : vector<1x8xf32>
    %cst_12 = arith.constant 0.000000e+00 : f32
    %29 = vector.broadcast %cst_12 : f32 to vector<1x8xf32>
    %30 = arith.subf %29, %28 : vector<1x8xf32>
    %31 = math.exp %30 : vector<1x8xf32>
    %cst_13 = arith.constant 1.000000e+00 : f32
    %32 = vector.broadcast %cst_13 : f32 to vector<1x8xf32>
    %33 = arith.addf %32, %31 : vector<1x8xf32>
    %34 = math.log %33 : vector<1x8xf32>
    %35 = arith.addf %27, %34 : vector<1x8xf32>
    %c0_14 = arith.constant 0 : index
    %c0_15 = arith.constant 0 : index
    %36 = vector.load %arg5[%c0_14, %c0_15] : memref<1x8xf32, #tpu.memory_space<vmem>>, vector<1x8xf32>
    %37 = arith.mulf %25, %35 : vector<1x8xf32>
    %38 = arith.addf %36, %37 : vector<1x8xf32>
    %c0_16 = arith.constant 0 : index
    %c0_17 = arith.constant 0 : index
    %39 = vector.load %arg5[%c0_16, %c0_17] : memref<1x8xf32, #tpu.memory_space<vmem>>, vector<1x8xf32>
    tpu.vector_store %arg5[%c0_16, %c0_17], %38 {strides = array<i32>} : memref<1x8xf32, #tpu.memory_space<vmem>>, vector<1x8xf32>,
    %c0_18 = arith.constant 0 : index
    %c0_19 = arith.constant 0 : index
    %40 = vector.load %arg6[%c0_18, %c0_19] : memref<1x8xf32, #tpu.memory_space<vmem>>, vector<1x8xf32>
    %41 = arith.addf %40, %25 : vector<1x8xf32>
    %c0_20 = arith.constant 0 : index
    %c0_21 = arith.constant 0 : index
    %42 = vector.load %arg6[%c0_20, %c0_21] : memref<1x8xf32, #tpu.memory_space<vmem>>, vector<1x8xf32>
    tpu.vector_store %arg6[%c0_20, %c0_21], %41 {strides = array<i32>} : memref<1x8xf32, #tpu.memory_space<vmem>>, vector<1x8xf32>,
    %c0_i32_22 = arith.constant 0 : i32
    %43 = arith.cmpi eq, %arg1, %c0_i32_22 : i32
    %44 = arith.extui %43 : i1 to i32
    %c0_i32_23 = arith.constant 0 : i32
    %45 = arith.cmpi ne, %44, %c0_i32_23 : i32
    scf.if %45 {
      %c0_24 = arith.constant 0 : index
      %c0_25 = arith.constant 0 : index
      %46 = vector.load %arg5[%c0_24, %c0_25] : memref<1x8xf32, #tpu.memory_space<vmem>>, vector<1x8xf32>
      %cst_26 = arith.constant dense<0.000000e+00> : vector<1xf32>
      %47 = vector.multi_reduction <add>, %46, %cst_26 [1] : vector<1x8xf32> to vector<1xf32>
      %48 = vector.shape_cast %47 : vector<1xf32> to vector<1x1xf32>
      %c0_27 = arith.constant 0 : index
      %c0_28 = arith.constant 0 : index
      %49 = vector.load %arg6[%c0_27, %c0_28] : memref<1x8xf32, #tpu.memory_space<vmem>>, vector<1x8xf32>
      %cst_29 = arith.constant dense<0.000000e+00> : vector<1xf32>
      %50 = vector.multi_reduction <add>, %49, %cst_29 [1] : vector<1x8xf32> to vector<1xf32>
      %51 = vector.shape_cast %50 : vector<1xf32> to vector<1x1xf32>
      %52 = tpu.iota {dimensions = array<i32: 1>} : vector<1x128xi32>
      %c0_i32_30 = arith.constant 0 : i32
      %53 = vector.broadcast %c0_i32_30 : i32 to vector<1x128xi32>
      %54 = arith.cmpi eq, %52, %53 : vector<1x128xi32>
      %c1_i32_31 = arith.constant 1 : i32
      %55 = vector.broadcast %c1_i32_31 : i32 to vector<1x128xi32>
      %56 = arith.cmpi eq, %52, %55 : vector<1x128xi32>
      %cst_32 = arith.constant 0.000000e+00 : f32
      %57 = vector.shape_cast %51 : vector<1x1xf32> to vector<1x1xf32>
      %58 = vector.broadcast %57 : vector<1x1xf32> to vector<1x128xf32>
      %59 = vector.broadcast %cst_32 : f32 to vector<1x128xf32>
      %60 = arith.select %56, %58, %59 : vector<1x128xi1>, vector<1x128xf32>
      %61 = vector.shape_cast %48 : vector<1x1xf32> to vector<1x1xf32>
      %62 = vector.broadcast %61 : vector<1x1xf32> to vector<1x128xf32>
      %63 = arith.select %54, %62, %60 : vector<1x128xi1>, vector<1x128xf32>
      %c0_33 = arith.constant 0 : index
      %c0_34 = arith.constant 0 : index
      %c0_35 = arith.constant 0 : index
      %64 = vector.load %arg4[%c0_33, %c0_34, %c0_35] : memref<1x1x128xf32, #tpu.memory_space<vmem>>, vector<1x1x128xf32>
      %65 = vector.shape_cast %64 : vector<1x1x128xf32> to vector<1x128xf32>
      %66 = vector.shape_cast %63 : vector<1x128xf32> to vector<1x1x128xf32>
      tpu.vector_store %arg4[%c0_33, %c0_34, %c0_35], %66 {strides = array<i32>} : memref<1x1x128xf32, #tpu.memory_space<vmem>>, vector<1x1x128xf32>,
    } else {
    }
    return
  }
  func.func @transform_0(%arg0: i32, %arg1: i32) -> (i32, i32) {
    %c1_i32 = arith.constant 1 : i32
    %0 = arith.muli %arg0, %c1_i32 : i32
    %1 = arith.addi %0, %arg1 : i32
    %c0_i32 = arith.constant 0 : i32
    %2 = arith.minsi %1, %c0_i32 : i32
    %c0_i32_0 = arith.constant 0 : i32
    %c0_i32_1 = arith.constant 0 : i32
    return %c0_i32_0, %2 : i32, i32
  }
  func.func @transform_1(%arg0: i32, %arg1: i32) -> (i32, i32) {
    %c1_i32 = arith.constant 1 : i32
    %0 = arith.muli %arg0, %c1_i32 : i32
    %1 = arith.addi %0, %arg1 : i32
    %c0_i32 = arith.constant 0 : i32
    %2 = arith.minsi %1, %c0_i32 : i32
    %c0_i32_0 = arith.constant 0 : i32
    %c0_i32_1 = arith.constant 0 : i32
    return %c0_i32_0, %2 : i32, i32
  }
  func.func @transform_2(%arg0: i32, %arg1: i32) -> (i32, i32, i32) {
    %c0_i32 = arith.constant 0 : i32
    %c0_i32_0 = arith.constant 0 : i32
    %c0_i32_1 = arith.constant 0 : i32
    return %arg0, %c0_i32, %c0_i32_0 : i32, i32, i32
  }
}

</mosaic_0001>

<bundles_post_ra>
// kernel: tpu_custom_call.1
= control target key start
LH: loop header
LB: loop body
LE: loop exit
PB: predicated region body
PF: predicated region fallthrough
CT: control target
= control target key end

     0   :  { %7 = vsyncpa [#allocation5], 0  ;;  %s808_s0 = inlined_call_operand.hbm [shape: f32[2,8], index: 0, kind: input, shape index: {}]   ;;  %s809_s1 = inlined_call_operand.vmem [shape: s32[1,8], index: 1, kind: input, shape index: {}]   ;;  %s810_s2 = inlined_call_operand.hbm [shape: f32[2,1,128], index: 2, kind: output, shape index: {}]  }
   0x1   :  { %9 = vsyncpa [#allocation5 + $0x1], 0 }
   0x2   :  { %10 = vsyncpa [#allocation6], 0 }
   0x3   :  { %12 = vsyncpa [#allocation6 + $0x1], 0  ;;  %s631_s9 = smov 0   ;;  %s633_s10 = smov 0  }
   0x4   :  { %s635_s11 = smov 0   ;;  %s637_s12 = smov 0  }
   0x5   :  { %s639_s13 = smov 0   ;;  %s641_s14 = smov 0  }
   0x6   :  { %s643_s15 = smov 0   ;;  %s645_s16 = smov 0  }
   0x7 LB: > { %s370_s17 = sadd.s32 4294967295, %s610_s16   ;;  %s371_s18 = sadd.s32 4294967294, %s610_s16   ;;  %s610_s16 = sphi %s645_s16, %s18_s16   ;;  %s606_s15 = sphi %s643_s15, %s831_s15   ;;  %s602_s14 = sphi %s641_s14, %s830_s14   ;;  %s598_s13 = sphi %s639_s13, %s798_s13   ;;  %s594_s12 = sphi %s637_s12, %s829_s12   ;;  %s590_s11 = sphi %s635_s11, %s828_s11   ;;  %s586_s10 = sphi %s633_s10, %s827_s10   ;;  %s582_s9 = sphi %s631_s9, %s826_s9  }
   0x8   : > { %s30_s19 = sadd.s32 1, %s606_s15  ;;  %p579_p1 = scmp.ne.s32.totalorder %s598_s13, 0 }
   0x9   : > { %p32_p0 = scmp.ge.s32.totalorder %s30_s19, 2  ;;  %p51_p2 = scmp.eq.s32.totalorder %s610_s16, 0 }
   0xa   : > { %p56_p3 = scmp.ne.s32.totalorder %s598_s13, %s594_s12  ;;  %p57_p5 = scmp.eq.s32.totalorder %s370_s17, 0 }
   0xb   : > { %s833_s19 = smov (%p32_p0, %s30_s19), 0  ;;  %p677_p4 = por %p579_p1, %p51_p2 }
   0xc   : > { %p681_p6 = por %p57_p5, %p56_p3  ;;  %s98_s22 = ssub.s32 %s606_s15, %s833_s19 }
   0xd   : > { %p99_p7 = scmp.eq.s32.totalorder %s98_s22, 0  ;;  %s101_s23 = sadd.s32 1, %s590_s11 }
   0xe   : > { %s815_s21 = scalar_select %p681_p6, 1, 0 }
   0xf   : > { %s689_s24 = scalar_select %p99_p7, %s590_s11, %s101_s23  }
  0x10   : > { %p111_p8 = scmp.ne.s32.totalorder %s590_s11, %s586_s10  ;;  %p112_p9 = scmp.eq.s32.totalorder %s370_s17, 1 }
  0x11   : > { %p117_p10 = scmp.ne.s32.totalorder %s586_s10, %s582_s9  ;;  %p118_p11 = scmp.eq.s32.totalorder %s371_s18, 1 }
  0x12   : > { %p695_p12 = por %p112_p9, %p111_p8  ;;  %p397_p1 = scmp.lt.s32.totalorder %s610_s16, 2 }
  0x13   : > { %p700_p0 = por %p118_p11, %p117_p10  ;;  %s612_s27 = smov [#allocation4]  }
  0x14   : > { %s816_s25 = scalar_select %p695_p12, 1, 0 }
  0x15   : > { %s817_s26 = scalar_select %p700_p0, 1, 0 }
  0x16   : > { %s152_s28 = sshll.u32 %s612_s27, 4  ;;  %p707_p2 = pnand %p397_p1, %p677_p4  ;;  %s153_s28 = int_to_ptr.vmem [resolvable:$true] %s152_s28 }
  0x17   : > { %s477_s4 = scalar_lea.hbm %s808_s0, 32 }
  0x18   : > { %s818_s29 = scalar_select %p707_p2, 1, 0 }
  0x19   : > { %p478_p7 = scmp.ne.s32.totalorder %s808_s0, %s477_s4  ;;  %p479_p8 = pneg %p707_p2 }
  0x1a   : > { %p484_p4 = scmp.lt.u32.totalorder %s477_s4, %s477_s4  ;;  %p486_p11 = scmp.lt.u32.totalorder %s477_s4, %s808_s0 }
  0x1b   : > { %p480_p9 = pnand %p479_p8, %p478_p7 }
  0x1c   : > { %p487_p1 = por %p486_p11, %p484_p4 }
  0x1d   : > { %p481_p10 = pneg %p480_p9 }
  0x1f   : > { %p488_p13 = pnand %p487_p1, %p481_p10 }
  0x21   : > { %491 = shalt.err (!%p488_p13)
}
  0x22   : > { %s492_s12 = scalar_lea.vmem %s153_s28, 32  ;;  %s499_s17 = scalar_lea.vmem %s153_s28, 64 }
  0x23   : > { %p493_p3 = scmp.ne.s32.totalorder %s153_s28, %s492_s12  ;;  %p500_p12 = scmp.lt.s32.totalorder %s153_s28, %s153_s28 }
  0x24   : > { %p501_p6 = scmp.lt.s32.totalorder %s499_s17, %s492_s12 }
  0x25   : > { %p495_p5 = pnand %p493_p3, %p479_p8 }
  0x26   : > { %p502_p2 = por %p501_p6, %p500_p12 }
  0x27   : > { %p496_p0 = pneg %p495_p5 }
  0x29   : > { %p503_p7 = pnand %p502_p2, %p496_p0 }
  0x2b   : > { %506 = shalt.err (!%p503_p7)
}
  0x2c   : > { %p819_p9 = scmp.ne.s32.totalorder %s818_s29, 0  ;;  %p820_p10 = scmp.lt.s32.totalorder %s610_s16, 3 }
  0x2d   : > { %p821_p13 = scmp.ge.s32.totalorder %s610_s16, 1 }
  0x2e   : > { %392 = dma.hbm_to_vmem [thread:$0]  (!%p819_p9), %s808_s0, 32, %s153_s28, [#allocation5]  }
  0x2f   : > { %p170_p4 = pnand %p821_p13, %p820_p10 }
  0x30   : > { %s175_s22 = sand.u32 (!%p170_p4), 1, %s598_s13   ;;  %p822_p6 = scmp.ne.s32.totalorder (!%p170_p4), %s815_s21, 0 }
  0x31   : > { %173 = sbr.rel (%p170_p4) target bundleno = 271 (0x10f), region = 28  ;;  %s377_s23 = sshll.u32 (!%p170_p4), %s175_s22, 1 }
  0x32   : > { %s176_s27 = scalar_lea.sflag (!%p170_p4), [#allocation5], %s175_s22  ;;  %s179_s30 = scalar_lea.vmem (!%p170_p4), [#allocation4], %s377_s23 }
  0x38   : > { %572 = dma.done.wait (%p822_p6), %s176_s27, 32  }
  0x39   : > { %574 = vsyncadd (%p822_p6), %s176_s27, 4294967264  ;;  %p209_p12 = scmp.lt.s32.totalorder %s602_s14, 0  ;;  %vm221_vm0 = vcmask 57344   ;;  %s381_s28 = sshll.u32 %s602_s14, 3  ;;  %v613_v0 = vmov 0.0   ;;  %v231_v1 = vlaneseq  ;;  %v614_v9 = vmov 1.0  }
  0x3a   : > { %223 = vst.msk [vmem:[#allocation3] sm:$0x1] %vm221_vm0, %v613_v0  ;;  %222 = vst.msk [vmem:[#allocation2] sm:$0x1] %vm221_vm0, %v613_v0  ;;  %s233_s3 = ssub.s32 8, %s381_s28  ;;  %s203_s6 = sand.u32 1, %s586_s10  }
  0x3b   : > { %s210_s29 = scalar_select %p209_p12, %s602_s14, 0  ;;  %v232_v2 = vand.u32 127, %v231_v1  ;;  %v234_v3 = vstv %s233_s3  ;;  %v224_v4 = vld [vmem:[%s179_s30] sm:$0x1]  ;;  %v225_v5 = vld [vmem:[%s179_s30 + $0x1] sm:$0x1] }
  0x3c   : > { %v226_v7 = vsub.f32 %v224_v4, %v225_v5  ;;  %s382_s7 = sshll.u32 %s602_s14, 4  ;;  %s204_s8 = scalar_lea.vmem [#allocation7], %s203_s6 }
  0x3d   : > { %s835_s29 = smov (!%p209_p12, %s210_s29), 0  ;;  %vm235_vm2 = vcmp.lt.s32.totalorder %v232_v2, %v234_v3  ;;  %vm270_vm3 = vcmp.eq.s32.totalorder %v232_v2, 1  ;;  %s287_s12 = sshll.u32 %s204_s8, 4  ;;  %vm269_vm4 = vcmp.eq.s32.totalorder %v232_v2, 0  ;;  %s757_s12 = int_to_ptr.vmem [resolvable:$true] %s287_s12 }
  0x3e   : > { %s213_s21 = scalar_lea.vmem %s809_s1, %s835_s29  ;;  %v236_v11 = vsub.f32 0.0, %v226_v7  ;;  %s755_s20 = scalar_lea.hbm %s810_s2, %s382_s7 }
  0x3f   : > { %v227_v6 = vld [vmem:[%s213_s21] sm:$0x1]  ;;  %s275_s22 = scalar_lea.sflag [#allocation6], %s203_s6  ;;  %s507_s23 = scalar_lea.vmem %s757_s12, 16 }
  0x40   : > { %vm228_vm1 = vcmp.eq.s32.totalorder %v227_v6, 1  ;;  %p508_p0 = scmp.ne.s32.totalorder %s757_s12, %s507_s23  ;;  %p823_p2 = scmp.ne.s32.totalorder %s816_s25, 0 }
  0x41   : > { %v255_v8 = vld [vmem:[#allocation3] sm:$0x1]  ;;  %v239_v10 = vsel %vm228_vm1, 1.2, %v614_v9  ;;  %v237_v14 = vsel %vm228_vm1, %v226_v7, %v236_v11  ;;  %v250_v27 = vld [vmem:[#allocation2] sm:$0x1] }
  0x42   : > { %v240_v12 = vsel %vm235_vm2, %v239_v10, 0.0  ;;  %v238_v15 = vsel %vm235_vm2, %v237_v14, 0.0  ;;  %p509_p3 = pnand %p508_p0, %p823_p2  ;;  %s615_s14 = smov [#allocation7]  }
  0x43   : > { %v256_v13 = vadd.f32 %v255_v8, %v240_v12  ;;  %v242_v16 = vand.u32 2147483647, %v238_v15  ;;  %v241_v23 = vmax.f32 %v238_v15, 0.0  ;;  %s511_s27 = sshll.u32 %s615_s14, 4  ;;  %s512_s27 = int_to_ptr.vmem [resolvable:$false] %s511_s27 }
  0x44   : > { %p510_p5 = pneg %p509_p3  ;;  %s513_s30 = scalar_lea.vmem %s512_s27, 32 }
  0x45   : > { %257 = vst.msk [vmem:[#allocation3] sm:$0x1] %vm221_vm0, %v256_v13  ;;  %v243_v17 = vsub.f32 0.0, %v242_v16  ;;  %p514_p8 = scmp.lt.s32.totalorder %s757_s12, %s512_s27  ;;  %p515_p11 = scmp.lt.s32.totalorder %s513_s30, %s507_s23 }
  0x47   : > { %v244_v18 = vmul.f32 1.442695, %v243_v17  ;;  %p516_p1 = por %p515_p11, %p514_p8 }
  0x49   : > { %473 = vpow2.f32 %v244_v18  ;;  %p517_p7 = pnand %p516_p1, %p510_p5 }
  0x4c   : > { %v265_v19 = vld [vmem:[#allocation3] sm:$0x1] }
  0x4d   : > { %v266_v20 = vsel %vm221_vm0, %v265_v19, 0.0 }
  0x4e   : > { %267 = vadd.xlane.f32.xlu0 %v266_v20 }
  0x53   : > { %v474_v21 = vpop.eup %473 }
  0x54   : > { %v246_v22 = vadd.f32 1.0, %v474_v21 }
  0x56   : > { %475 = vlog2.f32 %v246_v22 }
  0x60   : > { %v476_v24 = vpop.eup %475 }
  0x61   : > { %v248_v25 = vmul.f32 0.6931472, %v476_v24 }
  0x63   : > { %v249_v26 = vadd.f32 %v248_v25, %v241_v23 }
  0x65   : > { %v251_v28 = vmul.f32 %v249_v26, %v240_v12 }
  0x67   : > { %v252_v29 = vadd.f32 %v251_v28, %v250_v27 }
  0x69   : > { %254 = vst.msk [vmem:[#allocation2] sm:$0x1] %vm221_vm0, %v252_v29 }
  0x70   : > { %v261_v30 = vld [vmem:[#allocation2] sm:$0x1] }
  0x71   : > { %v262_v31 = vsel %vm221_vm0, %v261_v30, 0.0 }
  0x72   : > { %263 = vadd.xlane.f32.xlu0 %v262_v31 }
  0xdb   : > { %v268_v32 = vpop.xlane.xlu0 %267 }
  0xdc   : > { %v271_v33 = vsel %vm270_vm3, %v268_v32, 0.0 }
  0xff   : > { %v264_v34 = vpop.xlane.xlu0 %263 }
 0x100   : > { %v272_v35 = vsel %vm269_vm4, %v264_v34, %v271_v33 }
 0x101   : > { %273 = vst [vmem:[%s204_s8] sm:$0x1] %v272_v35 }
 0x102   : > { %520 = shalt.err (!%p517_p7)
}
 0x103   : > { %s521_s28 = scalar_lea.hbm %s755_s20, 16  ;;  %s525_s4 = scalar_lea.hbm %s810_s2, 32 }
 0x104   : > { %p522_p9 = scmp.ne.s32.totalorder %s755_s20, %s521_s28  ;;  %p526_p4 = scmp.lt.u32.totalorder %s755_s20, %s810_s2 }
 0x105   : > { %p527_p6 = scmp.lt.u32.totalorder %s525_s4, %s521_s28  ;;  %p529_p0 = scmp.lt.u32.totalorder %s521_s28, %s755_s20 }
 0x106   : > { %p523_p10 = pnand %p522_p9, %p823_p2 }
 0x107   : > { %p528_p12 = por %p527_p6, %p526_p4 }
 0x108   : > { %p524_p13 = pneg %p523_p10 }
 0x109   : > { %p530_p3 = por %p529_p0, %p528_p12 }
 0x10b   : > { %p531_p5 = pnand %p530_p3, %p524_p13 }
 0x10d   : > { %534 = shalt.err (!%p531_p5)
}
 0x10e   : > { %387 = dma.vmem_to_hbm [thread:$0]  (%p823_p2), %s757_s12, 16, %s755_s20, %s275_s22  }
 0x10f PF: > { %s299_s6 = sand.u32 1, %s582_s9   ;;  %p824_p8 = scmp.ne.s32.totalorder %s817_s26, 0 }
 0x110   : > { %p825_p11 = scmp.ge.s32.totalorder %s610_s16, 2  ;;  %s300_s7 = scalar_lea.sflag [#allocation6], %s299_s6 }
 0x112   : > { %p394_p1 = pnand %p825_p11, %p824_p8 }
 0x114   : > { %576 = dma.done.wait (!%p394_p1), %s300_s7, 16  }
 0x115   : > { %578 = vsyncadd (!%p394_p1), %s300_s7, 4294967280  ;;  %s18_s16 = sadd.s32 1, %s610_s16   ;;  %s826_s9 = smov %s586_s10 }
 0x116   : > { %p15_p7 = scmp.ge.s32.totalorder %s18_s16, 4   ;;  %s827_s10 = smov %s590_s11 }
 0x117   : > { %s828_s11 = smov %s689_s24  ;;  %s829_s12 = smov %s598_s13 }
 0x118   : > { %s798_s13 = smov 0   ;;  %s830_s14 = smov %s606_s15 }
 0x119   : > { %s831_s15 = smov %s833_s19  ;;  %17 = sbr.rel (!%p15_p7) target bundleno = 7 (0x7), region = 84 }
 0x120   :  { %304 = vsyncpa [#allocation5], 1 }
 0x121   :  { %306 = vsyncpa [#allocation5 + $0x1], 1 }
 0x122   :  { %307 = vsyncpa [#allocation6], 1 }
 0x123   :  { %309 = vsyncpa [#allocation6 + $0x1], 1 }

</bundles_post_ra>
